<compile_context>
chip_gen: v5e
topology: v5e:2x2
jax: 0.10.0
libtpu: 0.0.40
codegen_flags: <defaults>
</compile_context>

<pallas_src>
import numpy as np
import jax
import jax.numpy as jnp
from jax import lax
from jax.experimental import pallas as pl
from jax.experimental.pallas import tpu as pltpu


# ----------------------------------------------------------------------------
# small helpers
# ----------------------------------------------------------------------------
def _round_up(x, m):
    return ((x + m - 1) // m) * m


def _cdiv(a, b):
    return -(-a // b)


def _safe_normalize(x, eps=1e-4):
    """safe_norm from the reference: x / max(||x||_2, eps), computed as x*rsqrt."""
    sq = jnp.sum(x * x, axis=-1, keepdims=True)
    return x * lax.rsqrt(jnp.maximum(sq, eps * eps))


def _avg_pool2d(x, ksize):
    """x: [N, C, H, W]; non-overlapping average pooling (stride == kernel)."""
    if isinstance(ksize, int):
        kh = kw = ksize
    else:
        kh, kw = ksize
    n, c, h, w = x.shape
    return x.reshape(n, c, h // kh, kh, w // kw, kw).mean(axis=(3, 5))


def _flatten_q_cf(qry, dtype):
    """[B, C, H, W] -> [C, B*H*W] (column order: b-major, then h, then w).
    For B == 1 the transpose only moves a size-1 axis, so this is a free reshape
    (no HBM relayout).  Casting to bf16 halves the kernel's q read."""
    b, c, h, w = qry.shape
    q = jnp.transpose(qry, (1, 0, 2, 3)).reshape(c, b * h * w)
    return q.astype(dtype)


# ----------------------------------------------------------------------------
# Pallas kernel: cosine-similarity "1x1 conv" against a padded prototype bank.
#
#   nvalid_ref : [1]          i32   (SMEM scalar prefetch: # of valid prototypes)
#   q_ref      : [C, TILE]    bf16  (query pixels, pipelined tile, pixels on lanes)
#   pn_ref     : [P_pad, C]   bf16  (pre-normalized prototypes, resident in VMEM)
# outputs (per tile):
#   dists      : [P_pad, TILE] bf16 (only in the with_dists variant)
#   pred       : [1, TILE]     f32  (softmax-weighted similarity)
#   assign     : [1, TILE]     f32  (argmax prototype index)
# ----------------------------------------------------------------------------
def _make_proto_kernel(with_dists):
    def kernel(nvalid_ref, q_ref, pn_ref, *out_refs):
        if with_dists:
            dists_ref, pred_ref, assign_ref = out_refs
        else:
            pred_ref, assign_ref = out_refs

        eps = 1e-4
        # per-pixel safe_norm in f32 (sublane reduce over C, rsqrt on the EUP)
        q = q_ref[...].astype(jnp.float32)                          # [C, T]
        qsq = jnp.sum(q * q, axis=0, keepdims=True)                 # [1, T]
        qn = (q * lax.rsqrt(jnp.maximum(qsq, eps * eps))).astype(pn_ref.dtype)

        # d[p, t] = 20 * <pn[p, :], qn[:, t]>  — natural contraction, no transposes.
        d = lax.dot_general(
            pn_ref[...], qn,
            dimension_numbers=(((1,), (0,)), ((), ())),
            preferred_element_type=jnp.float32) * 20.0              # [P_pad, T] f32

        if with_dists:
            dists_ref[...] = d.astype(dists_ref.dtype)              # bf16 writeback

        # validity mask from the SMEM scalar — fused into max / exp (no bias pass).
        n_valid = nvalid_ref[0]
        p_pad = d.shape[0]
        row = lax.broadcasted_iota(jnp.int32, d.shape, 0)           # [P_pad, T]
        valid = row < n_valid

        m = jnp.max(jnp.where(valid, d, -1e30), axis=0, keepdims=True)   # [1, T]
        e = jnp.where(valid, jnp.exp(d - m), 0.0)                   # padded rows -> 0
        num = jnp.sum(e * d, axis=0)                                # [T]
        den = jnp.sum(e, axis=0)                                    # [T]
        pred = num * pl.reciprocal(den, approx=True)                # EUP reciprocal
        pred_ref[...] = pred.reshape(pred_ref.shape)

        # first-max index among valid rows (matches torch argmax tie semantics).
        argm = jnp.min(jnp.where(valid & (d == m), row, p_pad), axis=0)
        assign_ref[...] = argm.astype(jnp.float32).reshape(assign_ref.shape)

    return kernel


def _proto_cosine_pallas(q_cf, pn, n_valid, *, tile_hw=2048, with_dists=False,
                         dists_dtype=jnp.bfloat16):
    """q_cf: [C, HW] (bf16/f32), pn: [P_pad, C] pre-normalized, n_valid: i32 scalar.
    Returns (dists[P_pad, HW], pred[HW], assign[HW]) or (pred, assign)."""
    c, hw = q_cf.shape
    p_pad = pn.shape[0]

    # pad pixels only to a lane multiple (128), not to a tile multiple
    hw_pad = _round_up(hw, 128)
    if hw_pad != hw:
        q_cf = jnp.pad(q_cf, ((0, 0), (0, hw_pad - hw)))

    tile = max(128, (min(tile_hw, hw_pad) // 128) * 128)
    # guarantee >= 2 grid steps when possible so the "parallel" axis can shard
    # across v7x's two TensorCores (neutral on v5e/v6e).
    if hw_pad // tile < 2 and hw_pad >= 256:
        tile = _round_up(_cdiv(hw_pad, 2), 128)
    num_tiles = _cdiv(hw_pad, tile)      # ragged last block handled by Pallas

    kernel = _make_proto_kernel(with_dists)

    out_shape, out_specs = [], []
    if with_dists:
        out_shape.append(jax.ShapeDtypeStruct((p_pad, hw_pad), dists_dtype))
        out_specs.append(pl.BlockSpec((p_pad, tile), lambda i, nv: (0, i)))
    out_shape += [jax.ShapeDtypeStruct((1, hw_pad), jnp.float32),
                  jax.ShapeDtypeStruct((1, hw_pad), jnp.float32)]
    out_specs += [pl.BlockSpec((1, tile), lambda i, nv: (0, i)),
                  pl.BlockSpec((1, tile), lambda i, nv: (0, i))]

    # explicit VMEM budget: double-buffered q / dists + resident protos + f32
    # epilogue temporaries, clamped to [16 MiB, 64 MiB] (v5e default is only 16 MiB).
    q_isz = jnp.dtype(q_cf.dtype).itemsize
    pn_isz = jnp.dtype(pn.dtype).itemsize
    d_isz = jnp.dtype(dists_dtype).itemsize if with_dists else 0
    est = (2 * c * tile * q_isz
           + 2 * p_pad * c * pn_isz
           + 2 * p_pad * tile * d_isz
           + 2 * 2 * tile * 4
           + 8 * p_pad * tile * 4)
    vmem_limit = int(min(64 << 20, max(est, 16 << 20)))

    grid_spec = pltpu.PrefetchScalarGridSpec(
        num_scalar_prefetch=1,                    # n_valid lands in SMEM
        grid=(num_tiles,),
        in_specs=[
            pl.BlockSpec((c, tile), lambda i, nv: (0, i)),    # query tile (pipelined)
            pl.BlockSpec((p_pad, c), lambda i, nv: (0, 0)),   # prototypes resident
        ],
        out_specs=tuple(out_specs),
    )
    # NOTE: if the q DMA ever becomes exposed after this slimming, the q BlockSpec can
    # take pipeline_mode=pl.Buffered(3) for deeper prefetch at a few extra MiB of VMEM.
    outs = pl.pallas_call(
        kernel,
        out_shape=tuple(out_shape),
        grid_spec=grid_spec,
        compiler_params=pltpu.CompilerParams(
            dimension_semantics=("parallel",),
            vmem_limit_bytes=vmem_limit),
    )(jnp.asarray(n_valid, jnp.int32).reshape(1), q_cf, pn)

    if with_dists:
        dists, pred, assign = outs
        return dists[:, :hw], pred[0, :hw], assign[0, :hw]
    pred, assign = outs
    return pred[0, :hw], assign[0, :hw]


# ----------------------------------------------------------------------------
# Module port.
# ----------------------------------------------------------------------------
class MultiProtoAsConvPallas:
    def __init__(self, proto_grid, feature_hw, upsample_mode='bilinear',
                 tile_hw=2048, matmul_dtype=jnp.bfloat16, query_dtype=jnp.bfloat16,
                 dists_dtype=jnp.bfloat16):
        self.proto_grid = proto_grid
        self.upsample_mode = upsample_mode
        self.kernel_size = [ft_l // grid_l
                            for ft_l, grid_l in zip(feature_hw, proto_grid)]
        self.tile_hw = tile_hw
        self.matmul_dtype = matmul_dtype
        self.query_dtype = query_dtype
        self.dists_dtype = dists_dtype

    def forward(self, qry, sup_x, sup_y, mode, thresh,
                isval=False, val_wsize=None, vis_sim=False, **kwargs):
        # qry:   [way(1), nb(1), nc, h, w]
        # sup_x: [way(1), shot, nb(1), nc, h, w]
        # sup_y: [way(1), shot, nb(1), h, w]
        qry = qry[:, 0]                    # squeeze(1)            -> [way, nc, h, w]
        sup_x = sup_x[0][:, 0]             # squeeze(0).squeeze(1) -> [shot, nc, h, w]
        sup_y = sup_y[0]                   # squeeze(0)            -> [shot, 1, h, w]

        b, nch, h, w = qry.shape
        eps = 1e-4

        if mode == 'mask':
            # Single prototype: keep on the VPU / plain JAX (N=1 matmul would
            # waste the MXU).
            proto = (jnp.sum(sup_x * sup_y, axis=(-1, -2)) /
                     (jnp.sum(sup_y, axis=(-1, -2)) + 1e-5))          # [shot, nc]
            proto = jnp.mean(proto, axis=0, keepdims=True)            # [1, nc]
            qsq = jnp.sum(qry * qry, axis=1, keepdims=True)
            qn = qry * lax.rsqrt(jnp.maximum(qsq, eps * eps))         # [b, nc, h, w]
            pn = _safe_normalize(proto)                               # [1, nc]
            pred_mask = jnp.einsum('bchw,pc->bphw', qn, pn)[:, 0] * 20.0
            vis_dict = {'proto_assign': None}
            if vis_sim:
                vis_dict['raw_local_sims'] = pred_mask
            return pred_mask[:, None], [pred_mask], vis_dict

        elif mode in ('gridconv', 'gridconv+'):
            sup_nshot = sup_x.shape[0]
            ks = val_wsize if isval else self.kernel_size

            n_sup_x = _avg_pool2d(sup_x, ks)                          # [shot, nc, hp, wp]
            n_sup_x = (n_sup_x.reshape(sup_nshot, nch, -1)
                       .transpose(0, 2, 1).reshape(-1, nch))          # [Ntot, nc]
            sup_y_g = _avg_pool2d(sup_y, ks).reshape(-1)              # [Ntot]
            n_tot = n_sup_x.shape[0]

            # --- jit-compatible, compaction-preserving prototype selection ---
            # Pad P to a static multiple of 16 (sublane granularity; the MXU M-dim
            # does not need 128).  Scatter selected prototypes into compacted order
            # so argmax indices match the reference.
            n_total_static = n_tot + (sup_nshot if mode == 'gridconv+' else 0)
            p_pad = max(16, _round_up(n_total_static, 16))

            sel = sup_y_g > thresh                                    # [Ntot] bool
            order = jnp.cumsum(sel.astype(jnp.int32)) - 1             # compacted slot
            n_local = jnp.sum(sel.astype(jnp.int32))
            dest = jnp.where(sel, order, p_pad)                       # invalid -> dump row
            bank = jnp.zeros((p_pad + 1, nch), jnp.float32).at[dest].set(n_sup_x)

            if mode == 'gridconv+':
                glb_proto = (jnp.sum(sup_x * sup_y, axis=(-1, -2)) /
                             (jnp.sum(sup_y, axis=(-1, -2)) + 1e-5))  # [shot, nc]
                glb_dest = n_local + jnp.arange(sup_nshot)
                bank = bank.at[glb_dest].set(glb_proto)
                n_valid = n_local + sup_nshot
            else:
                n_valid = n_local
            # Precondition (same as the PyTorch reference): n_valid > 0, i.e. at least
            # one pooled support cell above `thresh` (or gridconv+'s global proto).

            protos_pad = bank[:p_pad]                                 # [P_pad, nc]
            # Hoisted prototype normalization (f32), then cast once for the MXU.
            pn = _safe_normalize(protos_pad).astype(self.matmul_dtype)

            q_cf = _flatten_q_cf(qry, self.query_dtype)               # [nc, b*h*w]
            outs = _proto_cosine_pallas(
                q_cf, pn, n_valid.astype(jnp.int32),
                tile_hw=self.tile_hw, with_dists=vis_sim,
                dists_dtype=self.dists_dtype)

            if vis_sim:
                dists_pt, pred_row, assign_row = outs
            else:
                pred_row, assign_row = outs

            pred_grid = pred_row.reshape(b, h, w)[:, None]            # [way, 1, h, w]
            debug_assign = assign_row.reshape(b, h, w)                # [way, h, w]
            vis_dict = {'proto_assign': debug_assign}

            if vis_sim:
                # Single scalar host read, only on the visualization path, to reproduce
                # the reference's data-dependent output shape (the kernel itself is
                # static-shaped; no recompiles).
                num_p = int(n_valid)
                dists = jnp.transpose(
                    dists_pt[:num_p].astype(jnp.float32).reshape(num_p, b, h, w),
                    (1, 0, 2, 3))                                     # [way, P, h, w]
                vis_dict['raw_local_sims'] = dists

            return pred_grid, [debug_assign], vis_dict

        elif mode == 'kmeans':
            # TODO(synk): 'kmeans' mode depends on GmlvqModel (sklearn-lvq) host-side
            # iterative LVQ fitting; no clean Pallas equivalent.
            raise NotImplementedError("kmeans/LVQ mode not translatable to Pallas")
        else:
            raise NotImplementedError


# ----------------------------------------------------------------------------
# Pure-JAX reference of the hot path (mirrors the kernel's dtype policy:
# bf16 query DMA, f32 norms, bf16 MXU operands, f32 accumulation).
# ----------------------------------------------------------------------------
def _reference_cosine(q_flat, protos, matmul_dtype=jnp.bfloat16,
                      query_dtype=jnp.bfloat16):
    q = q_flat.astype(query_dtype).astype(jnp.float32)
    qn = _safe_normalize(q)
    pn = _safe_normalize(protos)
    d = jnp.dot(qn.astype(matmul_dtype), pn.astype(matmul_dtype).T,
                preferred_element_type=jnp.float32).astype(jnp.float32) * 20.0
    sm = jax.nn.softmax(d, axis=-1)
    pred = jnp.sum(sm * d, axis=-1)
    assign = jnp.argmax(d, axis=-1).astype(jnp.float32)
    return d, pred, assign


if __name__ == "__main__":
    key = jax.random.PRNGKey(0)
    way, shot, nb, nc, h, w = 1, 2, 1, 32, 16, 16
    k1, k2, k3 = jax.random.split(key, 3)

    qry = jax.random.normal(k1, (way, nb, nc, h, w), dtype=jnp.float32)
    sup_x = jax.random.normal(k2, (way, shot, nb, nc, h, w), dtype=jnp.float32)
    sup_y = (jax.random.uniform(k3, (way, shot, nb, h, w)) > 0.5
             ).astype(jnp.float32)

    module = MultiProtoAsConvPallas(proto_grid=(8, 8), feature_hw=(16, 16))

    pred_mask, _, _ = module.forward(qry, sup_x, sup_y, mode='mask', thresh=0.95)
    # vis_sim=False path (no-dists kernel variant — the fast common case)
    pred_fast, assign_fast, _ = module.forward(qry, sup_x, sup_y, mode='gridconv+',
                                               thresh=0.5, vis_sim=False)
    # vis_sim=True paths (dists stored in bf16)
    pred_grid, assign_g, vis_g = module.forward(qry, sup_x, sup_y, mode='gridconv',
                                                thresh=0.5, vis_sim=True)
    pred_gridp, assign_gp, vis_gp = module.forward(qry, sup_x, sup_y, mode='gridconv+',
                                                   thresh=0.5, vis_sim=True)
    jax.block_until_ready((pred_mask, pred_fast, pred_grid, pred_gridp))

    # --- sanity check of the Pallas hot path against pure JAX (gridconv+) ---
    sup_x_s, sup_y_s = sup_x[0][:, 0], sup_y[0]
    ks = module.kernel_size
    n_sup = (_avg_pool2d(sup_x_s, ks).reshape(shot, nc, -1)
             .transpose(0, 2, 1).reshape(-1, nc))
    y_g = _avg_pool2d(sup_y_s, ks).reshape(-1)
    sel_np = np.asarray(y_g) > 0.5
    glb = (jnp.sum(sup_x_s * sup_y_s, axis=(-1, -2)) /
           (jnp.sum(sup_y_s, axis=(-1, -2)) + 1e-5))
    protos_ref = jnp.concatenate([jnp.asarray(np.asarray(n_sup)[sel_np]), glb], axis=0)

    q_flat = jnp.transpose(qry[:, 0], (0, 2, 3, 1)).reshape(-1, nc)
    d_ref, pred_ref, assign_ref = _reference_cosine(q_flat, protos_ref)
    num_p = protos_ref.shape[0]
    d_ref = jnp.transpose(d_ref.reshape(way, h, w, num_p), (0, 3, 1, 2))
    # kernel stores dists in bf16 — round the reference the same way for comparison
    d_ref_q = d_ref.astype(jnp.bfloat16).astype(jnp.float32)
    pred_ref = pred_ref.reshape(way, 1, h, w)
    assign_ref = assign_ref.reshape(way, h, w)

    np.testing.assert_allclose(np.asarray(vis_gp['raw_local_sims']),
                               np.asarray(d_ref_q), atol=1.5e-2, rtol=1.5e-2)
    np.testing.assert_allclose(np.asarray(pred_gridp),
                               np.asarray(pred_ref), atol=5e-2, rtol=1e-2)
    np.testing.assert_allclose(np.asarray(pred_fast),
                               np.asarray(pred_ref), atol=5e-2, rtol=1e-2)
    match = float(np.mean(np.asarray(assign_gp[0]) == np.asarray(assign_ref)))
    assert match > 0.98, f"proto-assign mismatch rate too high: {1.0 - match:.4f}"
    match_fast = float(np.mean(np.asarray(assign_fast[0]) == np.asarray(assign_gp[0])))
    assert match_fast == 1.0, "vis/no-vis kernel variants disagree on proto_assign"

    print("KERNEL_OK")
</pallas_src>

<mosaic_0001>
module attributes {stable_mosaic.version = 11 : i64} {
  func.func @kernel(%arg0: i32, %arg1: memref<1xi32, #tpu.memory_space<smem>>, %arg2: memref<32x128xbf16, #tpu.memory_space<vmem>>, %arg3: memref<144x32xbf16, #tpu.memory_space<vmem>>, %arg4: memref<1x128xf32, #tpu.memory_space<vmem>>, %arg5: memref<1x128xf32, #tpu.memory_space<vmem>>) attributes {dimension_semantics = [#tpu.dimension_semantics<parallel>], iteration_bounds = array<i64: 2>, scalar_prefetch = 1 : i64, scratch_operands = 0 : i64, tpu.core_type = #tpu.core_type<tc>, window_params = [{transform_indices = @transform_0, window_bounds = array<i64: 32, 128>}, {pipeline_mode = #tpu.pipeline_mode<synchronous>, transform_indices = @transform_1, window_bounds = array<i64: 144, 32>}, {transform_indices = @transform_2, window_bounds = array<i64: 1, 128>}, {transform_indices = @transform_3, window_bounds = array<i64: 1, 128>}]} {
    %c0 = arith.constant 0 : index
    %c0_0 = arith.constant 0 : index
    %0 = vector.load %arg2[%c0, %c0_0] : memref<32x128xbf16, #tpu.memory_space<vmem>>, vector<32x128xbf16>
    %1 = arith.extf %0 : vector<32x128xbf16> to vector<32x128xf32>
    %2 = arith.mulf %1, %1 : vector<32x128xf32>
    %cst = arith.constant dense<0.000000e+00> : vector<128xf32>
    %3 = vector.multi_reduction <add>, %2, %cst [0] : vector<32x128xf32> to vector<128xf32>
    %4 = vector.shape_cast %3 : vector<128xf32> to vector<1x128xf32>
    %cst_1 = arith.constant 9.99999993E-9 : f32
    %5 = vector.broadcast %cst_1 : f32 to vector<1x128xf32>
    %6 = arith.maximumf %4, %5 : vector<1x128xf32>
    %7 = math.rsqrt %6 : vector<1x128xf32>
    %8 = vector.broadcast %7 : vector<1x128xf32> to vector<32x128xf32>
    %9 = arith.mulf %1, %8 : vector<32x128xf32>
    %10 = arith.truncf %9 : vector<32x128xf32> to vector<32x128xbf16>
    %c0_2 = arith.constant 0 : index
    %c0_3 = arith.constant 0 : index
    %11 = vector.load %arg3[%c0_2, %c0_3] : memref<144x32xbf16, #tpu.memory_space<vmem>>, vector<144x32xbf16>
    %cst_4 = arith.constant dense<0.000000e+00> : vector<144x128xf32>
    %12 = tpu.matmul %11, %10, %cst_4 {dimension_numbers = #tpu.dot_dimension_numbers<[1], [0], [0], [1], [0, 0, 1, 1], [], []>} : vector<144x32xbf16>, vector<32x128xbf16>, vector<144x128xf32> -> vector<144x128xf32>
    %cst_5 = arith.constant 2.000000e+01 : f32
    %13 = vector.broadcast %cst_5 : f32 to vector<144x128xf32>
    %14 = arith.mulf %12, %13 : vector<144x128xf32>
    %c0_6 = arith.constant 0 : index
    %15 = memref.load %arg1[%c0_6] : memref<1xi32, #tpu.memory_space<smem>>
    %16 = tpu.iota {dimensions = array<i32: 0>} : vector<144x128xi32>
    %17 = vector.broadcast %15 : i32 to vector<144x128xi32>
    %18 = arith.cmpi slt, %16, %17 : vector<144x128xi32>
    %cst_7 = arith.constant -1.000000e+30 : f32
    %19 = vector.broadcast %cst_7 : f32 to vector<144x128xf32>
    %20 = arith.select %18, %14, %19 : vector<144x128xi1>, vector<144x128xf32>
    %cst_8 = arith.constant dense<0xFF800000> : vector<128xf32>
    %21 = vector.multi_reduction <maximumf>, %20, %cst_8 [0] : vector<144x128xf32> to vector<128xf32>
    %22 = vector.shape_cast %21 : vector<128xf32> to vector<1x128xf32>
    %23 = vector.broadcast %22 : vector<1x128xf32> to vector<144x128xf32>
    %24 = arith.subf %14, %23 : vector<144x128xf32>
    %25 = math.exp %24 : vector<144x128xf32>
    %cst_9 = arith.constant 0.000000e+00 : f32
    %26 = vector.broadcast %cst_9 : f32 to vector<144x128xf32>
    %27 = arith.select %18, %25, %26 : vector<144x128xi1>, vector<144x128xf32>
    %28 = arith.mulf %27, %14 : vector<144x128xf32>
    %cst_10 = arith.constant dense<0.000000e+00> : vector<128xf32>
    %29 = vector.multi_reduction <add>, %28, %cst_10 [0] : vector<144x128xf32> to vector<128xf32>
    %cst_11 = arith.constant dense<0.000000e+00> : vector<128xf32>
    %30 = vector.multi_reduction <add>, %27, %cst_11 [0] : vector<144x128xf32> to vector<128xf32>
    %31 = tpu.reciprocal %30 {approx = true} : vector<128xf32> -> vector<128xf32>
    %32 = arith.mulf %29, %31 : vector<128xf32>
    %33 = vector.shape_cast %32 : vector<128xf32> to vector<1x128xf32>
    %c0_12 = arith.constant 0 : index
    %c0_13 = arith.constant 0 : index
    %34 = vector.load %arg4[%c0_12, %c0_13] : memref<1x128xf32, #tpu.memory_space<vmem>>, vector<1x128xf32>
    tpu.vector_store %arg4[%c0_12, %c0_13], %33 {strides = array<i32>} : memref<1x128xf32, #tpu.memory_space<vmem>>, vector<1x128xf32>,
    %35 = vector.broadcast %22 : vector<1x128xf32> to vector<144x128xf32>
    %36 = arith.cmpf oeq, %14, %35 : vector<144x128xf32>
    %37 = arith.andi %18, %36 : vector<144x128xi1>
    %c144_i32 = arith.constant 144 : i32
    %38 = vector.broadcast %c144_i32 : i32 to vector<144x128xi32>
    %39 = arith.select %37, %16, %38 : vector<144x128xi1>, vector<144x128xi32>
    %cst_14 = arith.constant dense<2147483647> : vector<128xi32>
    %40 = vector.multi_reduction <minsi>, %39, %cst_14 [0] : vector<144x128xi32> to vector<128xi32>
    %41 = arith.sitofp %40 : vector<128xi32> to vector<128xf32>
    %42 = vector.shape_cast %41 : vector<128xf32> to vector<1x128xf32>
    %c0_15 = arith.constant 0 : index
    %c0_16 = arith.constant 0 : index
    %43 = vector.load %arg5[%c0_15, %c0_16] : memref<1x128xf32, #tpu.memory_space<vmem>>, vector<1x128xf32>
    tpu.vector_store %arg5[%c0_15, %c0_16], %42 {strides = array<i32>} : memref<1x128xf32, #tpu.memory_space<vmem>>, vector<1x128xf32>,
    return
  }
  func.func @transform_0(%arg0: i32, %arg1: memref<1xi32, #tpu.memory_space<smem>>) -> (i32, i32) {
    %c0_i32 = arith.constant 0 : i32
    %c0_i32_0 = arith.constant 0 : i32
    return %c0_i32, %arg0 : i32, i32
  }
  func.func @transform_1(%arg0: i32, %arg1: memref<1xi32, #tpu.memory_space<smem>>) -> (i32, i32) {
    %c0_i32 = arith.constant 0 : i32
    %c0_i32_0 = arith.constant 0 : i32
    %c0_i32_1 = arith.constant 0 : i32
    return %c0_i32, %c0_i32_0 : i32, i32
  }
  func.func @transform_2(%arg0: i32, %arg1: memref<1xi32, #tpu.memory_space<smem>>) -> (i32, i32) {
    %c0_i32 = arith.constant 0 : i32
    %c0_i32_0 = arith.constant 0 : i32
    return %c0_i32, %arg0 : i32, i32
  }
  func.func @transform_3(%arg0: i32, %arg1: memref<1xi32, #tpu.memory_space<smem>>) -> (i32, i32) {
    %c0_i32 = arith.constant 0 : i32
    %c0_i32_0 = arith.constant 0 : i32
    return %c0_i32, %arg0 : i32, i32
  }
}

</mosaic_0001>

<bundles_post_ra>
// kernel: tpu_custom_call.1
= control target key start
LH: loop header
LB: loop body
LE: loop exit
PB: predicated region body
PF: predicated region fallthrough
CT: control target
= control target key end

     0   :  { %s1868_s0 = inlined_call_operand.<no memory space> [shape: s32[1], index: 0, kind: input, shape index: {}]   ;;  %s1869_s1 = inlined_call_operand.vmem [shape: bf16[32,256], index: 1, kind: input, shape index: {}]   ;;  %s1870_s2 = inlined_call_operand.vmem [shape: bf16[144,32], index: 2, kind: input, shape index: {}]   ;;  %s1871_s3 = inlined_call_operand.hbm [shape: f32[1,256], index: 3, kind: output, shape index: {0}]   ;;  %s1872_s4 = inlined_call_operand.hbm [shape: f32[1,256], index: 4, kind: output, shape index: {1}]  }
   0x1   :  { %10 = sst [smem:[#allocation3]] %s1868_s0 }
   0x2   :  { %11 = vsyncpa [#allocation6], 0 }
   0x3   :  { %13 = vsyncpa [#allocation6 + $0x1], 0 }
   0x4   :  { %14 = vsyncpa [#allocation8], 0 }
   0x5   :  { %16 = vsyncpa [#allocation8 + $0x1], 0  ;;  %s1160_s17 = smov 0   ;;  %s1162_s18 = smov 0  }
   0x6   :  { %s1164_s19 = smov 0   ;;  %s1166_s20 = smov 0  }
   0x7 LB: > { %s1181_s0 = sadd.s32 4294967295, %s1130_s20   ;;  %s874_s21 = sadd.s32 4294967294, %s1130_s20   ;;  %s1130_s20 = sphi %s1166_s20, %s1934_s20   ;;  %s1126_s19 = sphi %s1164_s19, %s1933_s19   ;;  %s1122_s18 = sphi %s1162_s18, %s1932_s18   ;;  %s1118_s17 = sphi %s1160_s17, %s1931_s17  }
   0x8   : > { %s1185_s22 = sadd.s32 1, %s1130_s20   ;;  %s29_s23 = sadd.s32 1, %s1126_s19 }
   0x9   : > { %s26_s24 = ssub.s32 %s1130_s20, %s1185_s22  ;;  %p36_p0 = scmp.ne.s32.totalorder %s1126_s19, %s1122_s18 }
   0xa   : > { %p27_p1 = scmp.eq.s32.totalorder %s26_s24, 0  ;;  %p37_p2 = scmp.eq.s32.totalorder %s1130_s20, 0 }
   0xb   : > { %p87_p3 = scmp.eq.s32.totalorder %s1181_s0, 1  ;;  %p92_p4 = scmp.ne.s32.totalorder %s1122_s18, %s1118_s17 }
   0xc   : > { %s1197_s25 = scalar_select %p27_p1, %s1126_s19, %s29_s23  }
   0xd   : > { %p38_p5 = por %p37_p2, %p36_p0  ;;  %p1199_p6 = por %p87_p3, %p36_p0 }
   0xe   : > { %p93_p7 = scmp.eq.s32.totalorder %s874_s21, 1  ;;  %p876_p9 = scmp.ge.s32.totalorder %s1130_s20, 2 }
  0x10   : > { %p1203_p8 = por %p93_p7, %p92_p4  ;;  %138 = sbr.rel (%p876_p9) target bundleno = 29 (0x1d), region = 20 }
  0x15   : > { %141 = sbr.rel (!%p38_p5) target bundleno = 29 (0x1d), region = 24  ;;  %s143_s28 = sand.u32 (%p38_p5), 1, %s1126_s19  }
  0x16   : > { %s878_s29 = sshll.u32 (%p38_p5), %s1130_s20, 2  ;;  %s877_s30 = sshll.u32 (%p38_p5), %s143_s28, 4 }
  0x17   : > { %s147_s7 = scalar_lea.vmem (%p38_p5), %s1869_s1, %s878_s29  ;;  %s145_s8 = scalar_lea.vmem (%p38_p5), [#allocation4], %s877_s30 }
  0x18   : > { %v164_v0 = vld [vmem:[%s147_s7] sm:$0xf] (%p38_p5)  ;;  %v166_v1 = vld [vmem:[%s147_s7 + $0x8] sm:$0xf] (%p38_p5)  ;;  %v168_v2 = vld [vmem:[%s147_s7 + $0x10] sm:$0xf] (%p38_p5) }
  0x19   : > { %165 = vst [vmem:[%s145_s8] sm:$0xf] (%p38_p5), %v164_v0  ;;  %v170_v3 = vld [vmem:[%s147_s7 + $0x18] sm:$0xf] (%p38_p5) }
  0x1a   : > { %167 = vst [vmem:[%s145_s8 + $0x4] sm:$0xf] %v166_v1 }
  0x1b   : > { %169 = vst [vmem:[%s145_s8 + $0x8] sm:$0xf] %v168_v2 }
  0x1c   : > { %171 = vst [vmem:[%s145_s8 + $0xc] sm:$0xf] %v170_v3 }
  0x1d PF: > { %p879_p10 = scmp.ge.s32.totalorder %s1130_s20, 1  ;;  %p202_p11 = scmp.lt.s32.totalorder %s1130_s20, 3 }
  0x1f   : > { %p203_p12 = pnand %p879_p10, %p202_p11 }
  0x21   : > { %206 = sbr.rel (%p203_p12) target bundleno = 374 (0x176), region = 65 }
  0x26   : > { %s1218_s9 = sand.u32 1, %s1122_s18   ;;  %v928_v37 = vld [vmem:[%s1870_s2] sm:$0xff]  ;;  %v930_v38 = vld [vmem:[%s1870_s2 + $0x10] sm:$0xff]  ;;  %vm337_vm3 = vcmask 261120   ;;  %v933_v40 = vld [vmem:[%s1870_s2 + $0x28] sm:$0xff]  ;;  %s437_s13 = sld [smem:[#allocation3]]  ;;  %v438_v53 = vlaneseq }
  0x27   : > { %s880_s10 = sshll.u32 %s1218_s9, 4  ;;  %v934_v39 = vld [vmem:[%s1870_s2 + $0x30] sm:$0xff]  ;;  %v929_v41 = vld [vmem:[%s1870_s2 + $0x8] sm:$0xff]  ;;  %v931_v42 = vld [vmem:[%s1870_s2 + $0x18] sm:$0xff]  ;;  %s781_s16 = scalar_lea.hbm %s1872_s4, %s1181_s0 }
  0x28   : > { %s211_s11 = scalar_lea.vmem [#allocation4], %s880_s10  ;;  %v935_v43 = vld [vmem:[%s1870_s2 + $0x38] sm:$0xff]  ;;  %v932_v44 = vld [vmem:[%s1870_s2 + $0x20] sm:$0xff]  ;;  %v1261_v54 = vshrl.u32 %v438_v53, 7  ;;  %s234_s21 = scalar_lea.vmem [#allocation7], %s1218_s9 }
  0x29   : > { %v938_v4 = vld [vmem:[%s211_s11] sm:$0xff]   ;;  %v945_v5 = vld [vmem:[%s211_s11 + $0x8] sm:$0xff]   ;;  %s1811_s23 = sshll.u32 %s234_s21, 4  ;;  %s1813_s24 = sshll.u32 %s781_s16, 4  ;;  %s784_s23 = int_to_ptr.vmem [resolvable:$true] %s1811_s23  ;;  %s786_s24 = int_to_ptr.hbm [resolvable:$true] %s1813_s24 }
  0x2a   : > { %v939_v6 = vunpack.c.l.bf16 %v938_v4  ;;  %v940_v7 = vunpack.c.h.bf16 %v938_v4  ;;  %v943_v8 = vunpack.c.l.bf16 %v945_v5  ;;  %v944_v9 = vunpack.c.h.bf16 %v945_v5  ;;  %v936_v45 = vld [vmem:[%s1870_s2 + $0x40] sm:$0xff]  ;;  %s768_s30 = scalar_lea.hbm %s1871_s3, %s1181_s0  ;;  %s228_s5 = scalar_lea.vmem [#allocation5], %s1218_s9 }
  0x2b   : > { %v1268_v60 = vadd.s32 32, %v1261_v54  ;;  %v1271_v61 = vadd.s32 8, %v1261_v54  ;;  %v1274_v62 = vadd.s32 40, %v1261_v54  ;;  %v1277_v63 = vadd.s32 16, %v1261_v54  ;;  %s1822_s6 = sshll.u32 %s228_s5, 4  ;;  %s1824_s7 = sshll.u32 %s768_s30, 4  ;;  %s771_s6 = int_to_ptr.vmem [resolvable:$true] %s1822_s6  ;;  %s773_s7 = int_to_ptr.hbm [resolvable:$true] %s1824_s7 }
  0x2c   : > { %v244_v10 = vmul.f32 %v939_v6, %v939_v6  ;;  %v245_v11 = vmul.f32 %v940_v7, %v940_v7  ;;  %v246_v12 = vmul.f32 %v943_v8, %v943_v8  ;;  %v247_v13 = vmul.f32 %v944_v9, %v944_v9  ;;  %s760_s8 = scalar_lea.sflag [#allocation8], %s1218_s9  ;;  %s1050_s10 = sshra.s32 %s786_s24, 4  ;;  %s1051_s10 = int_to_ptr.hbm [resolvable:$true] %s1050_s10 }
  0x2d   : > { %v1265_v59 = vstv %s437_s13  ;;  %v1280_v0 = vadd.s32 48, %v1261_v54  ;;  %v1285_v1 = vadd.s32 80, %v1261_v54  ;;  %v1290_v2 = vadd.s32 96, %v1261_v54  ;;  %s1052_s11 = scalar_lea.hbm %s1051_s10, 1  ;;  %s1056_s13 = scalar_lea.hbm %s1872_s4, 2 }
  0x2e   : > { %v248_v14 = vadd.f32 %v245_v11, %v244_v10  ;;  %vm458_vm4 = vcmp.lt.s32.totalorder %v1261_v54, %v1265_v59  ;;  %vm462_vm5 = vcmp.lt.s32.totalorder %v1268_v60, %v1265_v59  ;;  %vm459_vm6 = vcmp.lt.s32.totalorder %v1271_v61, %v1265_v59  ;;  %p1053_p13 = scmp.ne.s32.totalorder %s1051_s10, %s1052_s11  ;;  %p1057_p2 = scmp.lt.s32.totalorder %s1051_s10, %s1872_s4 }
  0x2f   : > { %v1295_v3 = vadd.s32 24, %v1261_v54  ;;  %vm463_vm7 = vcmp.lt.s32.totalorder %v1274_v62, %v1265_v59  ;;  %v1300_v5 = vadd.s32 104, %v1261_v54  ;;  %vm1885_vm8 = vcmp.lt.s32.totalorder %v1277_v63, %v1265_v59  ;;  %p1058_p3 = scmp.lt.s32.totalorder %s1056_s13, %s1052_s11 }
  0x30   : > { %v249_v15 = vadd.f32 %v248_v14, %v246_v12  ;;  %vm464_vm9 = vcmp.lt.s32.totalorder %v1280_v0, %v1265_v59  ;;  %v1312_v10 = vadd.s32 88, %v1261_v54  ;;  %v1315_v11 = vadd.s32 120, %v1261_v54  ;;  %p1054_p0 = pnand %p1053_p13, %p1199_p6 }
  0x31   : > { %vm468_vm10 = vcmp.lt.s32.totalorder %v1285_v1, %v1265_v59  ;;  %v1324_v14 = vadd.s32 64, %v1261_v54  ;;  %vm1884_vm11 = vcmp.lt.s32.totalorder %v1290_v2, %v1265_v59  ;;  %vm1886_vm12 = vcmp.lt.s32.totalorder %v1295_v3, %v1265_v59  ;;  %p1059_p4 = por %p1058_p3, %p1057_p2 }
  0x32   : > { %v250_v16 = vadd.f32 %v249_v15, %v247_v13  ;;  %vm1883_vm13 = vcmp.lt.s32.totalorder %v1300_v5, %v1265_v59  ;;  %vm1874_vm15 = vcmp.lt.s32.totalorder %v1312_v10, %v1265_v59  ;;  %p1055_p1 = pneg %p1054_p0 }
  0x34   : > { %v251_v17 = vrot.slane %v250_v16, 4  ;;  %p1060_p5 = pnand %p1059_p4, %p1055_p1 }
  0x36   : > { %v252_v18 = vadd.f32 %v251_v17, %v250_v16  ;;  %v1333_v17 = vadd.s32 112, %v1261_v54 }
  0x38   : > { %v253_v19 = vrot.slane %v252_v18, 2 }
  0x3a   : > { %v254_v20 = vadd.f32 %v253_v19, %v252_v18 }
  0x3c   : > { %v255_v21 = vrot.slane %v254_v20, 1 }
  0x3e   : > { %v256_v22 = vadd.f32 %v255_v21, %v254_v20 }
  0x40   : > { %v257_v23 = vmax.f32 %v256_v22, 1e-08  ;;  %v1346_v22 = vadd.s32 72, %v1261_v54 }
  0x42   : > { %996 = vrsqrt.f32 %v257_v23  ;;  %vm264_vm0 = vweird.f32 %v257_v23 }
  0x48   : > { %v997_v24 = vpop.eup %996 }
  0x49   : > { %v259_v25 = vmul.f32 %v997_v24, %v257_v23  ;;  %vm265_vm1 = vweird.f32 %v997_v24 }
  0x4a   : > { %vm266_vm2 = vmor %vm264_vm0, %vm265_vm1  ;;  %vm1880_vm0 = vcmp.lt.s32.totalorder %v1315_v11, %v1265_v59  ;;  %vm466_vm1 = vcmp.lt.s32.totalorder %v1324_v14, %v1265_v59 }
  0x4b   : > { %v260_v26 = vmul.f32 %v997_v24, %v259_v25 }
  0x4d   : > { %v261_v27 = vmul.f32 0.5, %v260_v26 }
  0x4f   : > { %v262_v28 = vsub.f32 1.5, %v261_v27 }
  0x51   : > { %v263_v29 = vmul.f32 %v997_v24, %v262_v28 }
  0x53   : > { %v267_v30 = vsel %vm266_vm2, %v997_v24, %v263_v29  ;;  %vm1873_vm2 = vcmp.lt.s32.totalorder %v1346_v22, %v1265_v59 }
  0x54   : > { %v270_v31 = vmul.f32 %v943_v8, %v267_v30  ;;  %v271_v32 = vmul.f32 %v944_v9, %v267_v30  ;;  %v268_v33 = vmul.f32 %v939_v6, %v267_v30  ;;  %v269_v34 = vmul.f32 %v940_v7, %v267_v30 }
  0x55   : > { %v1309_v9 = vadd.s32 56, %v1261_v54 }
  0x56   : > { %v273_v35 = vpack.c.bf16 %v271_v32, %v270_v31  ;;  %v272_v36 = vpack.c.bf16 %v269_v34, %v268_v33 }
  0x57   : > { %vm465_vm14 = vcmp.lt.s32.totalorder %v1309_v9, %v1265_v59 }
  0x58   : > { %371 = vmatpush.bf16.msra.mxu0 %v273_v35  ;;  %946 = vmatpush.bf16.msra.mxu1 %v273_v35 }
  0x59   : > { %948 = vmatpush.bf16.msra.mxu3 %v273_v35  ;;  %947 = vmatpush.bf16.msra.mxu2 %v273_v35 }
  0x5c   : > { %372 = vmatpush.bf16.msra.mxu0 %v272_v36  ;;  %949 = vmatpush.bf16.msra.mxu1 %v272_v36 }
  0x5d   : > { %951 = vmatpush.bf16.msra.mxu3 %v272_v36  ;;  %950 = vmatpush.bf16.msra.mxu2 %v272_v36 }
  0x5f   : > { %917 = vmatmul.msk.bf16.vlgmr.msra.gmra.mxu0 %vm337_vm3, %v928_v37  ;;  %919 = vmatmul.msk.bf16.vlgmr.msra.gmra.mxu1 %vm337_vm3, %v930_v38  ;;  %v1400_v38 = vadd.s32 128, %v1261_v54 }
  0x60   : > { %923 = vmatmul.msk.bf16.vlgmr.msra.gmra.mxu3 %vm337_vm3, %v934_v39  ;;  %922 = vmatmul.msk.bf16.vlgmr.msra.gmra.mxu2 %vm337_vm3, %v933_v40 }
  0x6f   : > { %918 = vmatmul.msk.bf16.gmra.mxu0 %vm337_vm3, %v929_v41  ;;  %920 = vmatmul.msk.bf16.gmra.mxu1 %vm337_vm3, %v931_v42 }
  0x70   : > { %924 = vmatmul.msk.bf16.gmra.mxu3 %vm337_vm3, %v935_v43  ;;  %v1411_v43 = vadd.s32 136, %v1261_v54 }
  0x72   : > { %1890 = vst [vmem:[#allocation12_spill] sm:$0xff] %v1411_v43 }
  0x7f   : > { %921 = vmatmul.msk.bf16.gmra.mxu1 %vm337_vm3, %v932_v44 }
  0x80   : > { %925 = vmatmul.msk.bf16.gmra.mxu3 %vm337_vm3, %v936_v45  ;;  %vm1882_vm3 = vcmp.lt.s32.totalorder %v1333_v17, %v1265_v59 }
  0xdc   : > { %v384_v46 = vpop.f32.mrf.mxu1  ;;  %v374_v47 = vpop.f32.mrf.mxu0 }
  0xdd   : > { %v1306_v7 = vmul.f32 20.0, %v374_v47  ;;  %v1317_v12 = vmul.f32 20.0, %v384_v46 }
  0xdf   : > { %v476_v23 = vsel %vm458_vm4, %v1306_v7, -1e+30  ;;  %v480_v24 = vsel %vm462_vm5, %v1317_v12, -1e+30 }
  0xe0   : > { %v494_v36 = vmax.f32 %v476_v23, %v480_v24 }
  0xe3   : > { %v1257_v48 = vpop.f32.mrf.mxu3  ;;  %v399_v58 = vpop.f32.mrf.mxu2 }
  0xe4   : > { %v386_v49 = vpop.f32.mrf.mxu1  ;;  %v376_v50 = vpop.f32.mrf.mxu0  ;;  %v1378_v29 = vmul.f32 20.0, %v399_v58  ;;  %v1397_v37 = vmul.f32 20.0, %v1257_v48 }
  0xe5   : > { %v1319_v13 = vmul.f32 20.0, %v376_v50  ;;  %v1328_v15 = vmul.f32 20.0, %v386_v49 }
  0xe6   : > { %v486_v48 = vsel %vm468_vm10, %v1378_v29, -1e+30 }
  0xe7   : > { %v477_v25 = vsel %vm459_vm6, %v1319_v13, -1e+30  ;;  %v481_v27 = vsel %vm463_vm7, %v1328_v15, -1e+30 }
  0xe8   : > { %v495_v40 = vmax.f32 %v477_v25, %v481_v27 }
  0xeb   : > { %v1259_v51 = vpop.f32.mrf.mxu3  ;;  %v401_v21 = vpop.f32.mrf.mxu2 }
  0xec   : > { %v389_v52 = vpop.f32.mrf.mxu1  ;;  %v379_v55 = vpop.f32.mrf.mxu0  ;;  %v1380_v30 = vmul.f32 20.0, %v401_v21  ;;  %v1414_v44 = vmul.f32 20.0, %v1259_v51 }
  0xed   : > { %v1330_v16 = vmul.f32 20.0, %v379_v55  ;;  %v1339_v18 = vmul.f32 20.0, %v389_v52  ;;  %v488_v55 = vsel %vm1884_vm11, %v1397_v37, -1e+30 }
  0xee   : > { %v487_v50 = vsel %vm1874_vm15, %v1380_v30, -1e+30  ;;  %vm1875_vm15 = vcmp.lt.s32.totalorder %v1411_v43, %v1265_v59 }
  0xef   : > { %v478_v28 = vsel %vm1885_vm8, %v1330_v16, -1e+30  ;;  %v482_v32 = vsel %vm464_vm9, %v1339_v18, -1e+30 }
  0xf0   : > { %v496_v45 = vmax.f32 %v478_v28, %v482_v32 }
  0xf2   : > { %v500_v58 = vmax.f32 %v496_v45, %v486_v48 }
  0xf3   : > { %v1263_v56 = vpop.f32.mrf.mxu3 }
  0xf4   : > { %v391_v57 = vpop.f32.mrf.mxu1  ;;  %v381_v8 = vpop.f32.mrf.mxu0  ;;  %v1425_v49 = vmul.f32 20.0, %v1263_v56 }
  0xf5   : > { %v1341_v19 = vmul.f32 20.0, %v381_v8  ;;  %v1343_v20 = vmul.f32 20.0, %v391_v57  ;;  %v489_v57 = vsel %vm1883_vm13, %v1414_v44, -1e+30 }
  0xf6   : > { %v490_v8 = vsel %vm1882_vm3, %v1425_v49, -1e+30 }
  0xf7   : > { %v479_v33 = vsel %vm1886_vm12, %v1341_v19, -1e+30  ;;  %v483_v34 = vsel %vm465_vm14, %v1343_v20, -1e+30 }
  0xf8   : > { %v497_v46 = vmax.f32 %v479_v33, %v483_v34 }
  0xfb   : > { %v411_v4 = vpop.f32.mrf.mxu3 }
  0xfc   : > { %v394_v6 = vpop.f32.mrf.mxu1  ;;  %v1404_v41 = vmul.f32 20.0, %v411_v4  ;;  %v501_v4 = vmax.f32 %v497_v46, %v487_v50 }
  0xfd   : > { %v1366_v26 = vmul.f32 20.0, %v394_v6 }
  0xfe   : > { %1889 = vst [vmem:[#allocation11_spill] sm:$0xff] %v1404_v41  ;;  %v491_v56 = vsel %vm1880_vm0, %v1404_v41, -1e+30 }
  0xff   : > { %v484_v42 = vsel %vm466_vm1, %v1366_v26, -1e+30  ;;  %v505_v24 = vmax.f32 %v501_v4, %v491_v56 }
 0x100   : > { %v498_v52 = vmax.f32 %v494_v36, %v484_v42 }
 0x102   : > { %v502_v25 = vmax.f32 %v498_v52, %v488_v55 }
 0x103   : > { %v414_v31 = vpop.f32.mrf.mxu3 }
 0x104   : > { %v396_v35 = vpop.f32.mrf.mxu1  ;;  %v1431_v51 = vmul.f32 20.0, %v414_v31  ;;  %v504_v31 = vmax.f32 %v500_v58, %v490_v8 }
 0x105   : > { %v1402_v39 = vmul.f32 20.0, %v396_v35 }
 0x106   : > { %v509_v34 = vmax.f32 %v504_v31, %v505_v24 }
 0x107   : > { %v485_v47 = vsel %vm1873_vm2, %v1402_v39, -1e+30  ;;  %vm1881_vm2 = vcmp.lt.s32.totalorder %v1400_v38, %v1265_v59 }
 0x108   : > { %v499_v53 = vmax.f32 %v495_v40, %v485_v47  ;;  %v492_v21 = vsel %vm1881_vm2, %v1431_v51, -1e+30 }
 0x109   : > { %v506_v32 = vmax.f32 %v502_v25, %v492_v21 }
 0x10a   : > { %v503_v27 = vmax.f32 %v499_v53, %v489_v57 }
 0x10b   : > { %v416_v6 = vpop.f32.mrf.mxu3 }
 0x10c   : > { %v1459_v23 = vmul.f32 20.0, %v416_v6 }
 0x10e   : > { %v493_v28 = vsel %vm1875_vm15, %v1459_v23, -1e+30 }
 0x10f   : > { %v507_v33 = vmax.f32 %v503_v27, %v493_v28 }
 0x111   : > { %v508_v35 = vmax.f32 %v506_v32, %v507_v33 }
 0x113   : > { %v510_v36 = vmax.f32 %v508_v35, %v509_v34 }
 0x115   : > { %v511_v40 = vrot.slane %v510_v36, 4 }
 0x117   : > { %v512_v42 = vmax.f32 %v510_v36, %v511_v40 }
 0x119   : > { %v513_v45 = vrot.slane %v512_v42, 2 }
 0x11b   : > { %v514_v46 = vmax.f32 %v512_v42, %v513_v45 }
 0x11d   : > { %v515_v47 = vrot.slane %v514_v46, 1 }
 0x11f   : > { %v1465_v48 = vmax.f32 %v514_v46, %v515_v47 }
 0x121   : > { %v517_v50 = vsub.f32 %v1306_v7, %v1465_v48  ;;  %v518_v52 = vsub.f32 %v1319_v13, %v1465_v48  ;;  %v519_v53 = vsub.f32 %v1330_v16, %v1465_v48  ;;  %v520_v55 = vsub.f32 %v1341_v19, %v1465_v48 }
 0x122   : > { %v521_v56 = vsub.f32 %v1317_v12, %v1465_v48  ;;  %v522_v57 = vsub.f32 %v1328_v15, %v1465_v48  ;;  %v523_v58 = vsub.f32 %v1339_v18, %v1465_v48  ;;  %v524_v4 = vsub.f32 %v1343_v20, %v1465_v48 }
 0x123   : > { %v525_v6 = vsub.f32 %v1366_v26, %v1465_v48  ;;  %v526_v8 = vsub.f32 %v1402_v39, %v1465_v48  ;;  %v527_v21 = vsub.f32 %v1378_v29, %v1465_v48  ;;  %v535_v24 = vmul.f32 1.442695, %v517_v50 }
 0x124   : > { %v537_v25 = vmul.f32 1.442695, %v518_v52  ;;  %v528_v27 = vsub.f32 %v1380_v30, %v1465_v48  ;;  %v529_v28 = vsub.f32 %v1397_v37, %v1465_v48  ;;  %v539_v31 = vmul.f32 1.442695, %v519_v53 }
 0x125   : > { %v541_v32 = vmul.f32 1.442695, %v520_v55  ;;  %v530_v33 = vsub.f32 %v1414_v44, %v1465_v48  ;;  %v531_v34 = vsub.f32 %v1425_v49, %v1465_v48  ;;  %998 = vpow2.f32 %v535_v24 }
 0x126   : > { %v543_v35 = vmul.f32 1.442695, %v521_v56  ;;  %v532_v36 = vsub.f32 %v1404_v41, %v1465_v48  ;;  %v533_v40 = vsub.f32 %v1431_v51, %v1465_v48  ;;  %1000 = vpow2.f32 %v537_v25 }
 0x127   : > { %v545_v42 = vmul.f32 1.442695, %v522_v57  ;;  %v534_v45 = vsub.f32 %v1459_v23, %v1465_v48  ;;  %1002 = vpow2.f32 %v539_v31  ;;  %v547_v46 = vmul.f32 1.442695, %v523_v58 }
 0x128   : > { %vm656_vm15 = vcmp.eq.f32.partialorder %v1306_v7, %v1465_v48  ;;  %1004 = vpow2.f32 %v541_v32  ;;  %v549_v47 = vmul.f32 1.442695, %v524_v4  ;;  %v551_v50 = vmul.f32 1.442695, %v525_v6 }
 0x129   : > { %v553_v52 = vmul.f32 1.442695, %v526_v8  ;;  %1006 = vpow2.f32 %v543_v35  ;;  %v555_v53 = vmul.f32 1.442695, %v527_v21  ;;  %v557_v55 = vmul.f32 1.442695, %v528_v27 }
 0x12a   : > { %v559_v56 = vmul.f32 1.442695, %v529_v28  ;;  %1008 = vpow2.f32 %v545_v42  ;;  %v561_v24 = vmul.f32 1.442695, %v530_v33  ;;  %v563_v25 = vmul.f32 1.442695, %v531_v34 }
 0x12b   : > { %v565_v57 = vmul.f32 1.442695, %v532_v36  ;;  %v999_v41 = vpop.eup %998  ;;  %1010 = vpow2.f32 %v547_v46  ;;  %v1505_v43 = vmul.f32 1.442695, %v533_v40  ;;  %v1507_v58 = vmul.f32 1.442695, %v534_v45 }
 0x12c   : > { %vm657_vm0 = vcmp.eq.f32.partialorder %v1319_v13, %v1465_v48  ;;  %v1001_v4 = vpop.eup %1000  ;;  %1012 = vpow2.f32 %v549_v47  ;;  %v571_v6 = vsel %vm458_vm4, %v999_v41, 0.0  ;;  %vm660_vm2 = vcmp.eq.f32.partialorder %v1317_v12, %v1465_v48 }
 0x12d   : > { %vm661_vm3 = vcmp.eq.f32.partialorder %v1328_v15, %v1465_v48  ;;  %v1003_v8 = vpop.eup %1002  ;;  %1014 = vpow2.f32 %v551_v50  ;;  %v572_v21 = vsel %vm459_vm6, %v1001_v4, 0.0  ;;  %v589_v27 = vmul.f32 %v571_v6, %v1306_v7 }
 0x12e   : > { %v1005_v28 = vpop.eup %1004  ;;  %1016 = vpow2.f32 %v553_v52  ;;  %v573_v41 = vsel %vm1885_vm8, %v1003_v8, 0.0  ;;  %v590_v31 = vmul.f32 %v572_v21, %v1319_v13  ;;  %v630_v32 = vadd.f32 %v572_v21, %v571_v6  ;;  %vm1541_vm8 = vmand %vm458_vm4, %vm656_vm15 }
 0x12f   : > { %v1007_v33 = vpop.eup %1006  ;;  %1018 = vpow2.f32 %v555_v53  ;;  %v574_v34 = vsel %vm1886_vm12, %v1005_v28, 0.0  ;;  %vm665_vm11 = vcmp.eq.f32.partialorder %v1402_v39, %v1465_v48  ;;  %vm668_vm13 = vcmp.eq.f32.partialorder %v1397_v37, %v1465_v48  ;;  %vm1559_vm15 = vmand %vm459_vm6, %vm657_vm0 }
 0x130   : > { %v1009_v36 = vpop.eup %1008  ;;  %1020 = vpow2.f32 %v557_v55  ;;  %v591_v40 = vmul.f32 %v573_v41, %v1330_v16  ;;  %v607_v42 = vadd.f32 %v590_v31, %v589_v27  ;;  %vm669_vm12 = vcmp.eq.f32.partialorder %v1414_v44, %v1465_v48  ;;  %vm1570_vm4 = vmand %vm462_vm5, %vm660_vm2 }
 0x131   : > { %v1011_v45 = vpop.eup %1010  ;;  %1022 = vpow2.f32 %v559_v56  ;;  %v575_v7 = vsel %vm462_vm5, %v1007_v33, 0.0  ;;  %v631_v46 = vadd.f32 %v630_v32, %v573_v41  ;;  %v592_v52 = vmul.f32 %v574_v34, %v1341_v19 }
 0x132   : > { %v1013_v50 = vpop.eup %1012  ;;  %1024 = vpow2.f32 %v561_v24  ;;  %v608_v53 = vadd.f32 %v607_v42, %v591_v40  ;;  %v1577_v55 = vsel %vm1541_vm8, %v1261_v54, 144  ;;  %v576_v24 = vsel %vm463_vm7, %v1009_v36, 0.0  ;;  %vm1611_vm8 = vmand %vm463_vm7, %vm661_vm3 }
 0x133   : > { %v1015_v56 = vpop.eup %1014  ;;  %1026 = vpow2.f32 %v563_v25  ;;  %v577_v4 = vsel %vm464_vm9, %v1011_v45, 0.0  ;;  %v632_v6 = vadd.f32 %v631_v46, %v574_v34  ;;  %v578_v21 = vsel %vm465_vm14, %v1013_v50, 0.0 }
 0x134   : > { %v1017_v8 = vpop.eup %1016  ;;  %1028 = vpow2.f32 %v565_v57  ;;  %v593_v54 = vmul.f32 %v575_v7, %v1317_v12  ;;  %v609_v27 = vadd.f32 %v608_v53, %v592_v52  ;;  %v579_v25 = vsel %vm466_vm1, %v1015_v56, 0.0 }
 0x135   : > { %v1019_v28 = vpop.eup %1018  ;;  %v633_v41 = vadd.f32 %v632_v6, %v575_v7  ;;  %vm673_vm5 = vcmp.eq.f32.partialorder %v1459_v23, %v1465_v48  ;;  %v693_v57 = vsel %vm1559_vm15, %v1271_v61, 144  ;;  %v696_v31 = vsel %vm1570_vm4, %v1268_v60, 144 }
 0x136   : > { %v1021_v32 = vpop.eup %1020  ;;  %vm1897_vm6 = vcmp.lt.s32.totalorder %v1346_v22, %v1265_v59  ;;  %v594_v33 = vmul.f32 %v576_v24, %v1328_v15  ;;  %v595_v34 = vmul.f32 %v577_v4, %v1339_v18  ;;  %v610_v35 = vadd.f32 %v609_v27, %v593_v54 }
 0x137   : > { %v580_v12 = vsel %vm1897_vm6, %v1017_v8, 0.0  ;;  %v1023_v60 = vpop.eup %1022  ;;  %1030 = vpow2.f32 %v1505_v43  ;;  %v581_v36 = vsel %vm468_vm10, %v1019_v28, 0.0  ;;  %v596_v40 = vmul.f32 %v578_v21, %v1343_v20 }
 0x138   : > { %v634_v42 = vadd.f32 %v633_v41, %v576_v24  ;;  %vm1900_vm0 = vcmp.eq.f32.partialorder %v1366_v26, %v1465_v48  ;;  %v1025_v45 = vpop.eup %1024  ;;  %vm1903_vm2 = vcmp.lt.s32.totalorder %v1312_v10, %v1265_v59  ;;  %vm1904_vm3 = vcmp.lt.s32.totalorder %v1290_v2, %v1265_v59 }
 0x139   : > { %vm1626_vm7 = vmand %vm466_vm1, %vm1900_vm0  ;;  %v582_v43 = vsel %vm1903_vm2, %v1021_v32, 0.0  ;;  %v1636_v7 = vsel %vm1904_vm3, %v1023_v60, 0.0  ;;  %v597_v46 = vmul.f32 %v579_v25, %v1366_v26  ;;  %v611_v47 = vadd.f32 %v610_v35, %v594_v33  ;;  %v1027_v52 = vpop.eup %1026 }
 0x13a   : > { %vm1905_vm1 = vmmov %vm1897_vm6  ;;  %1032 = vpow2.f32 %v1507_v58  ;;  %vm1908_vm15 = vcmp.lt.s32.totalorder %v1300_v5, %v1265_v59  ;;  %v598_v26 = vmul.f32 %v580_v12, %v1402_v39  ;;  %v635_v13 = vadd.f32 %v634_v42, %v577_v4  ;;  %v1029_v56 = vpop.eup %1028 }
 0x13b   : > { %vm1645_vm4 = vmand %vm1905_vm1, %vm665_vm11  ;;  %v1653_v53 = vsel %vm1908_vm15, %v1025_v45, 0.0  ;;  %vm1910_vm0 = vcmp.lt.s32.totalorder %v1333_v17, %v1265_v59  ;;  %v599_v24 = vmul.f32 %v581_v36, %v1378_v29  ;;  %v612_v6 = vadd.f32 %v611_v47, %v595_v34 }
 0x13c   : > { %vm1909_vm11 = vmmov %vm1904_vm3  ;;  %v1665_v58 = vsel %vm1910_vm0, %v1027_v52, 0.0  ;;  %v697_v39 = vsel %vm1611_vm8, %v1274_v62, 144  ;;  %v600_v4 = vmul.f32 %v582_v43, %v1380_v30  ;;  %v601_v8 = vmul.f32 %v1636_v7, %v1397_v37 }
 0x13d   : > { %vm686_vm6 = vmand %vm1909_vm11, %vm668_vm13  ;;  %v636_v54 = vadd.f32 %v635_v13, %v578_v21  ;;  %vm1912_vm13 = vcmp.eq.f32.partialorder %v1431_v51, %v1465_v48  ;;  %vm1913_vm1 = vcmp.lt.s32.totalorder %v1400_v38, %v1265_v59  ;;  %v700_v27 = vsel %vm1626_vm7, %v1324_v14, 144  ;;  %v1031_v41 = vpop.eup %1030 }
 0x13e   : > { %vm1911_vm2 = vmmov %vm1908_vm15  ;;  %v602_v62 = vmul.f32 %v1653_v53, %v1414_v44  ;;  %v613_v28 = vadd.f32 %v612_v6, %v596_v40  ;;  %v701_v37 = vsel %vm1645_vm4, %v1346_v22, 144  ;;  %v704_v21 = vsel %vm686_vm6, %v1290_v2, 144 }
 0x13f   : > { %vm687_vm3 = vmand %vm1911_vm2, %vm669_vm12  ;;  %vm1914_vm12 = vcmp.lt.s32.totalorder %v1315_v11, %v1265_v59  ;;  %v603_v33 = vmul.f32 %v1665_v58, %v1425_v49  ;;  %v637_v14 = vadd.f32 %v636_v54, %v579_v25  ;;  %vm710_vm8 = vcmp.lt.s32.totalorder %v1577_v55, %v696_v31  ;;  %v1915_v25 = vld [vmem:[#allocation12_spill] sm:$0xff] }
 0x140   : > { %vm690_vm15 = vmand %vm1913_vm1, %vm1912_vm13  ;;  %v1698_v32 = vsel %vm1914_vm12, %v1029_v56, 0.0  ;;  %v705_v34 = vsel %vm687_vm3, %v1300_v5, 144  ;;  %v614_v44 = vadd.f32 %v613_v28, %v597_v46  ;;  %vm712_vm7 = vcmp.lt.s32.totalorder %v693_v57, %v697_v39  ;;  %v1033_v22 = vpop.eup %1032 }
 0x141   : > { %v708_v35 = vsel %vm690_vm15, %v1400_v38, 144  ;;  %v638_v2 = vadd.f32 %v637_v14, %v580_v12  ;;  %v711_v61 = vsel %vm710_vm8, %v1577_v55, %v696_v31  ;;  %v713_v60 = vsel %vm712_vm7, %v693_v57, %v697_v39 }
 0x142   : > { %vm658_vm4 = vcmp.eq.f32.partialorder %v1330_v16, %v1465_v48  ;;  %v615_v40 = vadd.f32 %v614_v44, %v598_v26  ;;  %vm1916_vm11 = vcmp.lt.s32.totalorder %v1915_v25, %v1265_v59  ;;  %vm718_vm0 = vcmp.lt.s32.totalorder %v711_v61, %v700_v27 }
 0x143   : > { %vm691_vm6 = vmand %vm1916_vm11, %vm673_vm5  ;;  %vm720_vm2 = vcmp.lt.s32.totalorder %v713_v60, %v701_v37  ;;  %vm659_vm3 = vcmp.eq.f32.partialorder %v1341_v19, %v1465_v48  ;;  %v639_v5 = vadd.f32 %v638_v2, %v581_v36  ;;  %v719_v12 = vsel %vm718_vm0, %v711_v61, %v700_v27 }
 0x144   : > { %v721_v55 = vsel %vm720_vm2, %v713_v60, %v701_v37  ;;  %vm662_vm13 = vcmp.eq.f32.partialorder %v1339_v18, %v1465_v48  ;;  %v616_v16 = vadd.f32 %v615_v40, %v599_v24  ;;  %vm726_vm1 = vcmp.lt.s32.totalorder %v719_v12, %v704_v21 }
 0x145   : > { %vm728_vm15 = vcmp.lt.s32.totalorder %v721_v55, %v705_v34  ;;  %vm663_vm12 = vcmp.eq.f32.partialorder %v1343_v20, %v1465_v48  ;;  %vm1917_vm5 = vcmp.lt.s32.totalorder %v1277_v63, %v1265_v59  ;;  %v640_v19 = vadd.f32 %v639_v5, %v582_v43 }
 0x146   : > { %vm1723_vm8 = vmand %vm1917_vm5, %vm658_vm4  ;;  %v709_v31 = vsel %vm691_vm6, %v1915_v25, 144  ;;  %v727_v36 = vsel %vm726_vm1, %v719_v12, %v704_v21  ;;  %v729_v42 = vsel %vm728_vm15, %v721_v55, %v705_v34  ;;  %vm1920_vm7 = vcmp.lt.s32.totalorder %v1295_v3, %v1265_v59 }
 0x147   : > { %vm1731_vm11 = vmand %vm1920_vm7, %vm659_vm3  ;;  %v617_v45 = vadd.f32 %v616_v16, %v600_v4  ;;  %vm734_vm0 = vcmp.lt.s32.totalorder %v727_v36, %v708_v35  ;;  %vm736_vm2 = vcmp.lt.s32.totalorder %v729_v42, %v709_v31  ;;  %vm666_vm4 = vcmp.eq.f32.partialorder %v1378_v29, %v1465_v48 }
 0x148   : > { %vm680_vm6 = vmand %vm464_vm9, %vm662_vm13  ;;  %vm1923_vm1 = vcmp.lt.s32.totalorder %v1400_v38, %v1265_v59  ;;  %v641_v46 = vadd.f32 %v640_v19, %v1636_v7  ;;  %v735_v47 = vsel %vm734_vm0, %v727_v36, %v708_v35  ;;  %vm667_vm3 = vcmp.eq.f32.partialorder %v1380_v30, %v1465_v48  ;;  %v1924_v30 = vld [vmem:[#allocation11_spill] sm:$0xff] }
 0x149   : > { %v587_v43 = vsel %vm1923_vm1, %v1031_v41, 0.0  ;;  %vm681_vm15 = vmand %vm465_vm14, %vm663_vm12  ;;  %v618_v18 = vadd.f32 %v617_v45, %v601_v8  ;;  %v737_v29 = vsel %vm736_vm2, %v729_v42, %v709_v31  ;;  %vm670_vm9 = vcmp.eq.f32.partialorder %v1425_v49, %v1465_v48 }
 0x14a   : > { %v694_v38 = vsel %vm1723_vm8, %v1277_v63, 144  ;;  %v642_v7 = vadd.f32 %v641_v46, %v1653_v53  ;;  %vm671_vm13 = vcmp.eq.f32.partialorder %v1924_v30, %v1465_v48  ;;  %vm1766_vm5 = vmand %vm468_vm10, %vm666_vm4  ;;  %v695_v50 = vsel %vm1731_vm11, %v1295_v3, 144 }
 0x14b   : > { %v698_v52 = vsel %vm680_vm6, %v1280_v0, 144  ;;  %vm1927_vm14 = vcmp.lt.s32.totalorder %v1915_v25, %v1265_v59  ;;  %v604_v53 = vmul.f32 %v1698_v32, %v1924_v30  ;;  %v619_v26 = vadd.f32 %v618_v18, %v602_v62 }
 0x14c   : > { %v588_v63 = vsel %vm1927_vm14, %v1033_v22, 0.0  ;;  %vm1928_vm10 = vcmp.lt.s32.totalorder %v1312_v10, %v1265_v59  ;;  %v699_v13 = vsel %vm681_vm15, %v1309_v9, 144  ;;  %v605_v56 = vmul.f32 %v587_v43, %v1431_v51 }
 0x14d   : > { %vm685_vm12 = vmand %vm1928_vm10, %vm667_vm3  ;;  %v643_v3 = vadd.f32 %v642_v7, %v1665_v58  ;;  %vm738_vm8 = vcmp.lt.s32.totalorder %v735_v47, %v737_v29  ;;  %vm1929_vm7 = vcmp.lt.s32.totalorder %v1333_v17, %v1265_v59  ;;  %vm714_vm0 = vcmp.lt.s32.totalorder %v694_v38, %v698_v52 }
 0x14e   : > { %vm688_vm11 = vmand %vm1929_vm7, %vm670_vm9  ;;  %v620_v0 = vadd.f32 %v619_v26, %v603_v33  ;;  %vm1930_vm2 = vcmp.lt.s32.totalorder %v1315_v11, %v1265_v59  ;;  %v702_v9 = vsel %vm1766_vm5, %v1285_v1, 144  ;;  %v715_v51 = vsel %vm714_vm0, %v694_v38, %v698_v52 }
 0x14f   : > { %vm689_vm4 = vmand %vm1930_vm2, %vm671_vm13  ;;  %vm716_vm6 = vcmp.lt.s32.totalorder %v695_v50, %v699_v13  ;;  %v644_v49 = vadd.f32 %v643_v3, %v1698_v32  ;;  %v703_v58 = vsel %vm685_vm12, %v1312_v10, 144  ;;  %vm722_vm1 = vcmp.lt.s32.totalorder %v715_v51, %v702_v9 }
 0x150   : > { %v717_v24 = vsel %vm716_vm6, %v695_v50, %v699_v13  ;;  %v621_v6 = vadd.f32 %v620_v0, %v604_v53  ;;  %v706_v39 = vsel %vm688_vm11, %v1333_v17, 144  ;;  %v723_v48 = vsel %vm722_vm1, %v715_v51, %v702_v9 }
 0x151   : > { %vm724_vm3 = vcmp.lt.s32.totalorder %v717_v24, %v703_v58  ;;  %v645_v4 = vadd.f32 %v644_v49, %v587_v43  ;;  %v707_v59 = vsel %vm689_vm4, %v1315_v11, 144  ;;  %vm730_vm15 = vcmp.lt.s32.totalorder %v723_v48, %v706_v39 }
 0x152   : > { %v725_v8 = vsel %vm724_vm3, %v717_v24, %v703_v58  ;;  %v606_v1 = vmul.f32 %v588_v63, %v1459_v23  ;;  %v622_v54 = vadd.f32 %v621_v6, %v605_v56  ;;  %v731_v27 = vsel %vm730_vm15, %v723_v48, %v706_v39 }
 0x153   : > { %vm732_vm9 = vcmp.lt.s32.totalorder %v725_v8, %v707_v59  ;;  %v646_v62 = vadd.f32 %v645_v4, %v588_v63  ;;  %v739_v10 = vsel %vm738_vm8, %v735_v47, %v737_v29 }
 0x154   : > { %v733_v28 = vsel %vm732_vm9, %v725_v8, %v707_v59  ;;  %v623_v37 = vadd.f32 %v622_v54, %v606_v1 }
 0x155   : > { %vm740_vm13 = vcmp.lt.s32.totalorder %v731_v27, %v733_v28  ;;  %v647_v21 = vrot.slane %v646_v62, 4 }
 0x156   : > { %v741_v17 = vsel %vm740_vm13, %v731_v27, %v733_v28  ;;  %v624_v41 = vrot.slane %v623_v37, 4 }
 0x157   : > { %vm742_vm5 = vcmp.lt.s32.totalorder %v739_v10, %v741_v17  ;;  %v648_v32 = vadd.f32 %v647_v21, %v646_v62 }
 0x158   : > { %v743_v11 = vsel %vm742_vm5, %v739_v10, %v741_v17  ;;  %v625_v33 = vadd.f32 %v624_v41, %v623_v37 }
 0x159   : > { %v744_v14 = vrot.slane %v743_v11, 4  ;;  %v649_v23 = vrot.slane %v648_v32, 2 }
 0x15a   : > { %v626_v34 = vrot.slane %v625_v33, 2 }
 0x15b   : > { %vm745_vm14 = vcmp.lt.s32.totalorder %v743_v11, %v744_v14  ;;  %v650_v44 = vadd.f32 %v649_v23, %v648_v32 }
 0x15c   : > { %v746_v35 = vsel %vm745_vm14, %v743_v11, %v744_v14  ;;  %v627_v61 = vadd.f32 %v626_v34, %v625_v33 }
 0x15d   : > { %v747_v22 = vrot.slane %v746_v35, 2  ;;  %v651_v2 = vrot.slane %v650_v44, 1 }
 0x15e   : > { %v628_v5 = vrot.slane %v627_v61, 1 }
 0x15f   : > { %vm748_vm10 = vcmp.lt.s32.totalorder %v746_v35, %v747_v22  ;;  %v652_v60 = vadd.f32 %v651_v2, %v650_v44 }
 0x160   : > { %v749_v40 = vsel %vm748_vm10, %v746_v35, %v747_v22  ;;  %v629_v16 = vadd.f32 %v628_v5, %v627_v61 }
 0x161   : > { %v750_v25 = vrot.slane %v749_v40, 1  ;;  %1034 = vrcp.f32 %v652_v60 }
 0x163   : > { %vm751_vm12 = vcmp.lt.s32.totalorder %v749_v40, %v750_v25 }
 0x164   : > { %v752_v12 = vsel %vm751_vm12, %v749_v40, %v750_v25 }
 0x165   : > { %v753_v55 = vcvt.s32.f32 %v752_v12 }
 0x167   : > { %754 = vst [vmem:[%s234_s21] sm:$0x1] %v753_v55  ;;  %v1035_v57 = vpop.eup %1034 }
 0x168   : > { %1063 = shalt.err (!%p1060_p5)
}
 0x169   : > { %953 = dma.vmem_to_hbm [thread:$0]  (%p1199_p6), %s784_s23, 16, %s786_s24, %s760_s8   ;;  %v654_v19 = vmul.f32 %v1035_v57, %v629_v16 }
 0x16a   : > { %s756_s16 = scalar_lea.sflag [#allocation6], %s1218_s9  ;;  %s1078_s21 = sshra.s32 %s773_s7, 4  ;;  %s1079_s21 = int_to_ptr.hbm [resolvable:$true] %s1078_s21 }
 0x16b   : > { %655 = vst [vmem:[%s228_s5] sm:$0x1] %v654_v19  ;;  %s1080_s28 = scalar_lea.hbm %s1079_s21, 1  ;;  %s1084_s10 = scalar_lea.hbm %s1871_s3, 2 }
 0x16c   : > { %p1081_p7 = scmp.ne.s32.totalorder %s1079_s21, %s1080_s28  ;;  %p1085_p12 = scmp.lt.s32.totalorder %s1079_s21, %s1871_s3 }
 0x16d   : > { %p1086_p13 = scmp.lt.s32.totalorder %s1084_s10, %s1080_s28 }
 0x16e   : > { %p1082_p10 = pnand %p1081_p7, %p1199_p6 }
 0x16f   : > { %p1087_p0 = por %p1086_p13, %p1085_p12 }
 0x170   : > { %p1083_p11 = pneg %p1082_p10 }
 0x172   : > { %p1088_p1 = pnand %p1087_p0, %p1083_p11 }
 0x174   : > { %1091 = shalt.err (!%p1088_p1)
}
 0x175   : > { %952 = dma.vmem_to_hbm [thread:$0]  (%p1199_p6), %s771_s6, 16, %s773_s7, %s756_s16  }
 0x176 PF: > { %s797_s9 = sand.u32 1, %s1118_s17   ;;  %p957_p2 = pnand %p876_p9, %p1203_p8 }
 0x177   : > { %s798_s23 = scalar_lea.sflag [#allocation6], %s797_s9 }
 0x178   : > { %p958_p3 = pneg %p957_p2 }
 0x17a   : > { %1109 = dma.done.wait (%p958_p3), %s798_s23, 16  }
 0x17b   : > { %1111 = vsyncadd (%p958_p3), %s798_s23, 4294967280  ;;  %s807_s24 = scalar_lea.sflag [#allocation8], %s797_s9 }
 0x17c   : > { %1113 = dma.done.wait (%p958_p3), %s807_s24, 16  }
 0x17d   : > { %1115 = vsyncadd (%p958_p3), %s807_s24, 4294967280  ;;  %p19_p6 = scmp.ge.s32.totalorder %s1185_s22, 4   ;;  %s1931_s17 = smov %s1122_s18 }
 0x17e   : > { %s1932_s18 = smov %s1126_s19  ;;  %s1933_s19 = smov %s1197_s25 }
 0x17f   : > { %s1934_s20 = smov %s1185_s22  ;;  %21 = sbr.rel (!%p19_p6) target bundleno = 7 (0x7), region = 126 }
 0x184   :  { %812 = vsyncpa [#allocation6], 1 }
 0x185   :  { %814 = vsyncpa [#allocation6 + $0x1], 1 }
 0x186   :  { %815 = vsyncpa [#allocation8], 1 }
 0x187   :  { %817 = vsyncpa [#allocation8 + $0x1], 1 }

</bundles_post_ra>
